<compile_context>
chip_gen: v5e
topology: v5e:2x2
jax: 0.10.0
libtpu: 0.0.40
codegen_flags: <defaults>
</compile_context>

<pallas_src>
import math

import jax
import jax.numpy as jnp
from jax.experimental import pallas as pl
from jax.experimental.pallas import tpu as pltpu


def xavier_uniform(key, shape, dtype=jnp.float32):
    """Deterministic stand-in for torch.nn.init.xavier_uniform_ (same fan rules)."""
    if len(shape) == 2:
        fan_out, fan_in = shape
    else:
        rf = 1
        for s in shape[2:]:
            rf *= s
        fan_in = shape[1] * rf
        fan_out = shape[0] * rf
    bound = math.sqrt(6.0 / (fan_in + fan_out))
    return jax.random.uniform(key, shape, dtype, minval=-bound, maxval=bound)


def _round_up(x, m):
    return ((x + m - 1) // m) * m


def _pack_factor(tensor_neurons):
    """How many graph pairs fit in one 128-lane output row."""
    if tensor_neurons <= 128 and 128 % tensor_neurons == 0:
        return 128 // tensor_neurons
    return 1


def pack_difference_weight(difference_matrix):
    """Build the kernel weight once (hoist next to the params).

    pack > 1: block-diagonal (pack*F, pack*T) with `pack` copies of W_diff^T.
    pack == 1 fallback: W_diff^T lane-padded to a multiple of 128 columns.
    """
    T, F = difference_matrix.shape
    pack = _pack_factor(T)
    wt = difference_matrix.T.astype(jnp.float32)                     # (F, T)
    if pack > 1:
        return jnp.kron(jnp.eye(pack, dtype=jnp.float32), wt)        # (pack*F, pack*T)
    t_pad = _round_up(T, 128)
    return jnp.zeros((F, t_pad), jnp.float32).at[:, :T].set(wt)      # (F, t_pad)


def _symdiff_packed_kernel(e1_ref, e2_ref, w_ref, out_ref):
    """out = relu(|e1 - e2| @ W)  on pack-pairs-per-row slabs (single MXU dot)."""
    d = jnp.abs(e1_ref[...].astype(jnp.float32) - e2_ref[...].astype(jnp.float32))
    out = jnp.dot(d, w_ref[...], preferred_element_type=jnp.float32)
    out_ref[...] = jnp.maximum(out, 0.0).astype(out_ref.dtype)       # lane-dense vst


def symdiff_forward(embedding_1, embedding_2, difference_matrix, *,
                    pair_tile=4096, packed_weight=None):
    """embedding_1/2: (B, F, 1) float (f32 or bf16)  ->  scores (B, T, 1) float32."""
    B, F, _ = embedding_1.shape
    T = difference_matrix.shape[0]
    pack = _pack_factor(T)

    if packed_weight is None:
        packed_weight = pack_difference_weight(difference_matrix)
    k_dim, out_cols = packed_weight.shape                            # (pack*F, pack*T) or (F, t_pad)

    # ---- trace-time layout plumbing (all reshapes below are contiguous / free) --------
    e1 = embedding_1[..., 0]                                          # (B, F)
    e2 = embedding_2[..., 0]

    # Only pad when B is not already a multiple of the pack factor (small, rare copy).
    b_p = _round_up(B, pack)
    if b_p != B:
        padcfg = ((0, b_p - B), (0, 0))
        e1 = jnp.pad(e1, padcfg)
        e2 = jnp.pad(e2, padcfg)

    rows = b_p // pack
    e1p = e1.reshape(rows, pack * F)                                  # free bitcast reshape
    e2p = e2.reshape(rows, pack * F)

    # ---- batch tile (in packed rows) ---------------------------------------------------
    if rows >= 8:
        rows_tile = min(max(pair_tile // pack, 8), _round_up(rows, 8))
        if rows > 8:
            # v7x: keep >= 2 grid steps so both TensorCores get work.
            rows_tile = min(rows_tile, _round_up(pl.cdiv(rows, 2), 8))
        # Keep per-step input blocks well under the default scoped-VMEM limit.
        itemsize = jnp.dtype(e1p.dtype).itemsize
        rows_tile = min(rows_tile, max(8, ((2 << 20) // (pack * F * itemsize)) // 8 * 8))
        rows_tile = max(8, rows_tile)
    else:
        rows_tile = rows                                              # tiny batch: one full block

    grid = (pl.cdiv(rows, rows_tile),)                                # partial edge block is fine

    out = pl.pallas_call(
        _symdiff_packed_kernel,
        out_shape=jax.ShapeDtypeStruct((rows, out_cols), jnp.float32),
        grid_spec=pltpu.PrefetchScalarGridSpec(
            num_scalar_prefetch=0,
            grid=grid,
            in_specs=[
                pl.BlockSpec((rows_tile, pack * F), lambda i: (i, 0)),   # e1 tile
                pl.BlockSpec((rows_tile, pack * F), lambda i: (i, 0)),   # e2 tile
                pl.BlockSpec((k_dim, out_cols), lambda i: (0, 0)),       # resident weight
            ],
            out_specs=pl.BlockSpec((rows_tile, out_cols), lambda i: (i, 0)),
        ),
        compiler_params=pltpu.CompilerParams(
            # Pair axis is embarrassingly parallel -> v7x's 2 TCs split the grid.
            dimension_semantics=("parallel",),
        ),
    )(e1p, e2p, packed_weight)

    # Unpack: (rows, pack*T) -> (b_p, T) is a contiguous (free) reshape; slice off padding.
    if pack > 1:
        scores2d = out.reshape(b_p, T)
    else:
        scores2d = out[:, :T]
    return scores2d[:B, :, None]                                      # (B, T, 1), PyTorch layout


def _reference(embedding_1, embedding_2, difference_matrix):
    """Pure-JAX reference of what the PyTorch forward returns."""
    return jax.nn.relu(
        jnp.einsum("tf,bfo->bto", difference_matrix, jnp.abs(embedding_1 - embedding_2)))


if __name__ == "__main__":
    F, T = 32, 16  # filters_dim[-1], tensor_neurons

    key = jax.random.PRNGKey(0)
    k1, k2, kw, kb, kbias, kd, ks, k3, k4 = jax.random.split(key, 9)

    # Full parameter set of the module (only difference_matrix affects the returned value).
    params = {
        "weight_matrix": xavier_uniform(kw, (F, F, T)),
        "weight_matrix_block": xavier_uniform(kb, (T, 2 * F)),
        "bias": xavier_uniform(kbias, (T, 1)),
        "difference_matrix": xavier_uniform(kd, (T, F)),
        "sym_matrix": xavier_uniform(ks, (T, F)),
    }
    # Hoisted once: block-diagonal packed weight (8 copies of W_diff^T -> (256, 128)).
    w_packed = pack_difference_weight(params["difference_matrix"])

    # --- check 1: tiny batch (B=2), single grid step -----------------------------------
    B1 = 2
    e1_a = jax.random.normal(k1, (B1, F, 1), jnp.float32)
    e2_a = jax.random.normal(k2, (B1, F, 1), jnp.float32)
    scores_a = symdiff_forward(e1_a, e2_a, params["difference_matrix"],
                               packed_weight=w_packed)
    scores_a = jax.block_until_ready(scores_a)
    ref_a = _reference(e1_a, e2_a, params["difference_matrix"])
    assert scores_a.shape == (B1, T, 1), scores_a.shape
    assert jnp.allclose(scores_a, ref_a, atol=1e-5, rtol=1e-5), "mismatch vs reference (B=2)"

    # --- check 2: multi-step grid + partial edge block + B not a multiple of 8 ---------
    B2 = 300
    e1_b = jax.random.normal(k3, (B2, F, 1), jnp.float32)
    e2_b = jax.random.normal(k4, (B2, F, 1), jnp.float32)
    scores_b = symdiff_forward(e1_b, e2_b, params["difference_matrix"],
                               packed_weight=w_packed)
    scores_b = jax.block_until_ready(scores_b)
    ref_b = _reference(e1_b, e2_b, params["difference_matrix"])
    assert scores_b.shape == (B2, T, 1), scores_b.shape
    assert jnp.allclose(scores_b, ref_b, atol=1e-5, rtol=1e-5), "mismatch vs reference (B=300)"

    print("KERNEL_OK")
</pallas_src>

<mosaic_0001>
module attributes {stable_mosaic.version = 11 : i64} {
  func.func @_symdiff_packed_kernel(%arg0: i32, %arg1: memref<1x256xf32, #tpu.memory_space<vmem>>, %arg2: memref<1x256xf32, #tpu.memory_space<vmem>>, %arg3: memref<256x128xf32, #tpu.memory_space<vmem>>, %arg4: memref<1x128xf32, #tpu.memory_space<vmem>>) attributes {dimension_semantics = [#tpu.dimension_semantics<parallel>], iteration_bounds = array<i64: 1>, scalar_prefetch = 0 : i64, scratch_operands = 0 : i64, tpu.core_type = #tpu.core_type<tc>, window_params = [{transform_indices = @transform_0, window_bounds = array<i64: 1, 256>}, {transform_indices = @transform_1, window_bounds = array<i64: 1, 256>}, {pipeline_mode = #tpu.pipeline_mode<synchronous>, transform_indices = @transform_2, window_bounds = array<i64: 256, 128>}, {transform_indices = @transform_3, window_bounds = array<i64: 1, 128>}]} {
    %c0 = arith.constant 0 : index
    %c0_0 = arith.constant 0 : index
    %0 = vector.load %arg1[%c0, %c0_0] : memref<1x256xf32, #tpu.memory_space<vmem>>, vector<1x256xf32>
    %c0_1 = arith.constant 0 : index
    %c0_2 = arith.constant 0 : index
    %1 = vector.load %arg2[%c0_1, %c0_2] : memref<1x256xf32, #tpu.memory_space<vmem>>, vector<1x256xf32>
    %2 = arith.subf %0, %1 : vector<1x256xf32>
    %3 = math.absf %2 : vector<1x256xf32>
    %c0_3 = arith.constant 0 : index
    %c0_4 = arith.constant 0 : index
    %4 = vector.load %arg3[%c0_3, %c0_4] : memref<256x128xf32, #tpu.memory_space<vmem>>, vector<256x128xf32>
    %cst = arith.constant dense<0.000000e+00> : vector<1x128xf32>
    %5 = tpu.matmul %3, %4, %cst {dimension_numbers = #tpu.dot_dimension_numbers<[1], [0], [0], [1], [0, 0, 1, 1], [], []>} : vector<1x256xf32>, vector<256x128xf32>, vector<1x128xf32> -> vector<1x128xf32>
    %cst_5 = arith.constant 0.000000e+00 : f32
    %6 = vector.broadcast %cst_5 : f32 to vector<1x128xf32>
    %7 = arith.maximumf %5, %6 : vector<1x128xf32>
    %c0_6 = arith.constant 0 : index
    %c0_7 = arith.constant 0 : index
    %8 = vector.load %arg4[%c0_6, %c0_7] : memref<1x128xf32, #tpu.memory_space<vmem>>, vector<1x128xf32>
    tpu.vector_store %arg4[%c0_6, %c0_7], %7 {strides = array<i32>} : memref<1x128xf32, #tpu.memory_space<vmem>>, vector<1x128xf32>,
    return
  }
  func.func @transform_0(%arg0: i32) -> (i32, i32) {
    %c0_i32 = arith.constant 0 : i32
    %c0_i32_0 = arith.constant 0 : i32
    return %arg0, %c0_i32 : i32, i32
  }
  func.func @transform_1(%arg0: i32) -> (i32, i32) {
    %c0_i32 = arith.constant 0 : i32
    %c0_i32_0 = arith.constant 0 : i32
    return %arg0, %c0_i32 : i32, i32
  }
  func.func @transform_2(%arg0: i32) -> (i32, i32) {
    %c0_i32 = arith.constant 0 : i32
    %c0_i32_0 = arith.constant 0 : i32
    %c0_i32_1 = arith.constant 0 : i32
    return %c0_i32, %c0_i32_0 : i32, i32
  }
  func.func @transform_3(%arg0: i32) -> (i32, i32) {
    %c0_i32 = arith.constant 0 : i32
    %c0_i32_0 = arith.constant 0 : i32
    return %arg0, %c0_i32 : i32, i32
  }
}

</mosaic_0001>

<bundles_post_ra>
// kernel: tpu_custom_call.1
= control target key start
LH: loop header
LB: loop body
LE: loop exit
PB: predicated region body
PF: predicated region fallthrough
CT: control target
= control target key end

     0   :  { %8 = vsyncpa [#allocation3], 0  ;;  %s305_s0 = inlined_call_operand.hbm [shape: f32[1,256], index: 0, kind: input, shape index: {}]   ;;  %s306_s1 = inlined_call_operand.hbm [shape: f32[1,256], index: 1, kind: input, shape index: {}]   ;;  %s307_s2 = inlined_call_operand.hbm [shape: f32[256,128], index: 2, kind: input, shape index: {}]   ;;  %s308_s3 = inlined_call_operand.hbm [shape: f32[1,128], index: 3, kind: output, shape index: {}]  }
   0x1   :  { %9 = vsyncpa [#allocation6], 0  ;;  %s27_s14 = sshll.u32 %s306_s1, 4  ;;  %s28_s14 = int_to_ptr.hbm [resolvable:$true] %s27_s14 }
   0x2   :  { %10 = vsyncpa [#allocation4], 0  ;;  %s267_s15 = smov [#allocation5]   ;;  %s16_s19 = sshll.u32 %s305_s0, 4  ;;  %s17_s19 = int_to_ptr.hbm [resolvable:$true] %s16_s19 }
   0x3   :  { %s29_s16 = sshll.u32 %s267_s15, 4  ;;  %s268_s20 = smov [#allocation2]   ;;  %s30_s16 = int_to_ptr.vmem [resolvable:$true] %s29_s16 }
   0x4   :  { %32 = dma.hbm_to_vmem [thread:$0]  %s28_s14, 32, %s30_s16, [#allocation6]  }
   0x5   :  { %s18_s21 = sshll.u32 %s268_s20, 4  ;;  %s37_s24 = sshll.u32 %s307_s2, 4  ;;  %s19_s21 = int_to_ptr.vmem [resolvable:$true] %s18_s21  ;;  %s38_s24 = int_to_ptr.hbm [resolvable:$true] %s37_s24 }
   0x6   :  { %21 = dma.hbm_to_vmem [thread:$0]  %s17_s19, 32, %s19_s21, [#allocation3]  }
   0x7   :  { %s269_s1 = smov [#allocation7]   ;;  %s270_s26 = smov 128  }
   0x8   :  { %s39_s25 = sshll.u32 %s269_s1, 4  ;;  %s271_s27 = smov 8   ;;  %s40_s25 = int_to_ptr.vmem [resolvable:$true] %s39_s25 }
   0x9   :  { %45 = dma.hbm_to_vmem [thread:$0]  %s38_s24, 4096, %s40_s25, [#allocation6], %s270_s26, %s270_s26, %s271_s27  }
   0xa   :  { %261 = dma.done.wait [#allocation3], 32  }
   0xb   :  { %262 = vsyncadd [#allocation3], 4294967264 }
   0xc   :  { %263 = dma.done.wait [#allocation6], 4128  }
   0xd   :  { %264 = vsyncadd [#allocation6], 4294963168  ;;  %v77_v0 = vld [vmem:[#allocation7 + $0x78] sm:$0xff]  ;;  %v76_v2 = vld [vmem:[#allocation7 + $0x70] sm:$0xff]  ;;  %s272_s0 = smov [#allocation8]   ;;  %s148_s30 = sshll.u32 %s308_s3, 4  ;;  %s149_s30 = int_to_ptr.hbm [resolvable:$true] %s148_s30 }
   0xe   :  { %v93_v1 = vld [vmem:[#allocation7 + $0xf8] sm:$0xff]  ;;  %99 = vmatpush.msra.mxu0 %v77_v0  ;;  %v92_v3 = vld [vmem:[#allocation7 + $0xf0] sm:$0xff]  ;;  %v75_v4 = vld [vmem:[#allocation7 + $0x68] sm:$0xff]  ;;  %s146_s2 = sshll.u32 %s272_s0, 4  ;;  %s147_s2 = int_to_ptr.vmem [resolvable:$true] %s146_s2 }
   0xf   :  { %119 = vmatpush.msra.mxu1 %v93_v1  ;;  %v91_v5 = vld [vmem:[#allocation7 + $0xe8] sm:$0xff]  ;;  %v74_v6 = vld [vmem:[#allocation7 + $0x60] sm:$0xff]  ;;  %v73_v8 = vld [vmem:[#allocation7 + $0x58] sm:$0xff] }
  0x10   :  { %100 = vmatpush.msra.mxu0 %v76_v2  ;;  %v90_v7 = vld [vmem:[#allocation7 + $0xe0] sm:$0xff]  ;;  %v89_v9 = vld [vmem:[#allocation7 + $0xd8] sm:$0xff]  ;;  %v72_v10 = vld [vmem:[#allocation7 + $0x50] sm:$0xff] }
  0x11   :  { %120 = vmatpush.msra.mxu1 %v92_v3  ;;  %v88_v11 = vld [vmem:[#allocation7 + $0xd0] sm:$0xff]  ;;  %v71_v12 = vld [vmem:[#allocation7 + $0x48] sm:$0xff]  ;;  %v70_v14 = vld [vmem:[#allocation7 + $0x40] sm:$0xff] }
  0x12   :  { %101 = vmatpush.msra.mxu0 %v75_v4  ;;  %v87_v13 = vld [vmem:[#allocation7 + $0xc8] sm:$0xff]  ;;  %v86_v15 = vld [vmem:[#allocation7 + $0xc0] sm:$0xff]  ;;  %v69_v16 = vld [vmem:[#allocation7 + $0x38] sm:$0xff] }
  0x13   :  { %121 = vmatpush.msra.mxu1 %v91_v5  ;;  %v85_v17 = vld [vmem:[#allocation7 + $0xb8] sm:$0xff]  ;;  %v68_v18 = vld [vmem:[#allocation7 + $0x30] sm:$0xff]  ;;  %v67_v22 = vld [vmem:[#allocation7 + $0x28] sm:$0xff] }
  0x14   :  { %102 = vmatpush.msra.mxu0 %v74_v6  ;;  %v84_v19 = vld [vmem:[#allocation7 + $0xb0] sm:$0xff]  ;;  %v58_v20 = vld [vmem:[#allocation2] sm:$0x3]  ;;  %v59_v21 = vld [vmem:[#allocation5] sm:$0x3] }
  0x15   :  { %122 = vmatpush.msra.mxu1 %v90_v7  ;;  %v83_v23 = vld [vmem:[#allocation7 + $0xa8] sm:$0xff]  ;;  %v66_v24 = vld [vmem:[#allocation7 + $0x20] sm:$0xff]  ;;  %v60_v26 = vsub.f32 %v58_v20, %v59_v21  ;;  %v65_v27 = vld [vmem:[#allocation7 + $0x18] sm:$0xff] }
  0x16   :  { %103 = vmatpush.msra.mxu0 %v73_v8  ;;  %v82_v25 = vld [vmem:[#allocation7 + $0xa0] sm:$0xff]  ;;  %v81_v28 = vld [vmem:[#allocation7 + $0x98] sm:$0xff]  ;;  %v64_v29 = vld [vmem:[#allocation7 + $0x10] sm:$0xff] }
  0x17   :  { %123 = vmatpush.msra.mxu1 %v89_v9  ;;  %v80_v30 = vld [vmem:[#allocation7 + $0x90] sm:$0xff]  ;;  %v61_v31 = vand.u32 2147483647, %v60_v26  ;;  %v63_v32 = vld [vmem:[#allocation7 + $0x8] sm:$0xff]  ;;  %v62_v34 = vld [vmem:[#allocation7] sm:$0xff] }
  0x18   :  { %104 = vmatpush.msra.mxu0 %v72_v10  ;;  %v79_v33 = vld [vmem:[#allocation7 + $0x88] sm:$0xff]  ;;  %v78_v35 = vld [vmem:[#allocation7 + $0x80] sm:$0xff] }
  0x19   :  { %124 = vmatpush.msra.mxu1 %v88_v11  ;;  %v95_v36 = vperm.slane %v61_v31, 0  ;;  %v96_v37 = vperm.slane %v61_v31, 1 }
  0x1a   :  { %105 = vmatpush.msra.mxu0 %v71_v12 }
  0x1b   :  { %125 = vmatpush.msra.mxu1 %v87_v13 }
  0x1c   :  { %106 = vmatpush.msra.mxu0 %v70_v14 }
  0x1d   :  { %126 = vmatpush.msra.mxu1 %v86_v15 }
  0x1e   :  { %107 = vmatpush.msra.mxu0 %v69_v16 }
  0x1f   :  { %127 = vmatpush.msra.mxu1 %v85_v17 }
  0x20   :  { %108 = vmatpush.msra.mxu0 %v68_v18 }
  0x21   :  { %128 = vmatpush.msra.mxu1 %v84_v19 }
  0x22   :  { %109 = vmatpush.msra.mxu0 %v67_v22 }
  0x23   :  { %129 = vmatpush.msra.mxu1 %v83_v23 }
  0x24   :  { %110 = vmatpush.msra.mxu0 %v66_v24 }
  0x25   :  { %130 = vmatpush.msra.mxu1 %v82_v25 }
  0x26   :  { %111 = vmatpush.msra.mxu0 %v65_v27 }
  0x27   :  { %131 = vmatpush.msra.mxu1 %v81_v28 }
  0x28   :  { %112 = vmatpush.msra.mxu0 %v64_v29 }
  0x29   :  { %132 = vmatpush.msra.mxu1 %v80_v30 }
  0x2a   :  { %113 = vmatpush.msra.mxu0 %v63_v32 }
  0x2b   :  { %133 = vmatpush.msra.mxu1 %v79_v33 }
  0x2c   :  { %114 = vmatpush.msra.mxu0 %v62_v34 }
  0x2d   :  { %134 = vmatpush.msra.mxu1 %v78_v35  ;;  %115 = vmatmul.f32.vlgmr.msra.gmra.mxu0 %v95_v36 }
  0x2e   :  { %135 = vmatmul.f32.vlgmr.msra.gmra.mxu1 %v96_v37 }
  0xaa   :  { %v116_v38 = vpop.f32.mrf.mxu0 }
  0xab   :  { %v136_v39 = vpop.f32.mrf.mxu1 }
  0xac   :  { %v137_v40 = vadd.f32 %v136_v39, %v116_v38 }
  0xae   :  { %v139_v41 = vmax.f32 %v137_v40, 0.0 }
  0xb0   :  { %140 = vst [vmem:[#allocation8] sm:$0x1] %v139_v41 }
  0xb1   :  { %151 = dma.vmem_to_hbm [thread:$0]  %s147_s2, 16, %s149_s30, [#allocation4]  }
  0xb2   :  { %265 = dma.done.wait [#allocation4], 16  }
  0xb3   :  { %266 = vsyncadd [#allocation4], 4294967280 }
  0xb4   :  { %156 = vsyncpa [#allocation3], 1 }
  0xb5   :  { %157 = vsyncpa [#allocation6], 1 }
  0xb6   :  { %158 = vsyncpa [#allocation4], 1 }

</bundles_post_ra>
